<compile_context>
chip_gen: v5e
topology: v5e:2x2
jax: 0.10.0
libtpu: 0.0.40
codegen_flags: <defaults>
</compile_context>

<pallas_src>
import functools

import jax
import jax.numpy as jnp
from jax.experimental import pallas as pl
from jax.experimental.pallas import tpu as pltpu


_LAYER_DIMS = [(2000, 6), (6, 4), (4, 3), (3, 1)]
_DROP_PS = (0.2, 0.5, 0.5, 0.5)


def _dropout_from_bits(x, bits, p):
    """Inverted dropout: drop with prob p, scale survivors by 1/(1-p).

    `bits` are raw uint32 randoms; P(bits < thresh) == p.
    """
    thresh = jnp.uint32(min(int(round(p * 4294967296.0)), 4294967295))
    scale = jnp.asarray(1.0 / (1.0 - p), dtype=x.dtype)
    return jnp.where(bits >= thresh, x * scale, jnp.zeros_like(x))


def _mlp_kernel(*refs, train):
    if train:
        (x_ref, m1_ref, m2_ref, m3_ref, m4_ref,
         w1_ref, b1_ref, w2_ref, b2_ref, w3_ref, b3_ref, w4_ref, b4_ref,
         o_ref) = refs
    else:
        (x_ref,
         w1_ref, b1_ref, w2_ref, b2_ref, w3_ref, b3_ref, w4_ref, b4_ref,
         o_ref) = refs

    x = x_ref[...]
    if train:
        x = _dropout_from_bits(x, m1_ref[...], _DROP_PS[0])

    # Layer 1: (TB, 2000) @ (2000, 6) — the only MXU/HBM-heavy matmul.
    h = jnp.dot(x, w1_ref[...], preferred_element_type=jnp.float32) + b1_ref[...]
    h = jnp.maximum(h, 0.0)
    if train:
        h = _dropout_from_bits(h, m2_ref[...], _DROP_PS[1])

    # Layers 2-4: tiny epilogue matmuls, kept in f32.
    h = jnp.dot(h, w2_ref[...], preferred_element_type=jnp.float32) + b2_ref[...]
    h = jnp.maximum(h, 0.0)
    if train:
        h = _dropout_from_bits(h, m3_ref[...], _DROP_PS[2])

    h = jnp.dot(h, w3_ref[...], preferred_element_type=jnp.float32) + b3_ref[...]
    h = jnp.maximum(h, 0.0)
    if train:
        h = _dropout_from_bits(h, m4_ref[...], _DROP_PS[3])

    o_ref[...] = (jnp.dot(h, w4_ref[...], preferred_element_type=jnp.float32)
                  + b4_ref[...])


def make_dropout_bits(rng_key, batch):
    """Host-generated raw uint32 bits, one array per dropout layer."""
    keys = jax.random.split(rng_key, 4)
    shapes = [(batch, _LAYER_DIMS[0][0]),               # before fc1: (B, 2000)
              (batch, _LAYER_DIMS[0][1]),               # after fc1:  (B, 6)
              (batch, _LAYER_DIMS[1][1]),               # after fc2:  (B, 4)
              (batch, _LAYER_DIMS[2][1])]               # after fc3:  (B, 3)
    return [jax.random.bits(k, s, dtype=jnp.uint32) for k, s in zip(keys, shapes)]


def dropout_net_relu(x, params, *, train=False, dropout_bits=None,
                     block_batch=512, cast_bf16=False):
    """Forward pass of Drop_out_Net_relu.  train=False == PyTorch .eval().

    block_batch ~512 keeps the per-tile VMEM footprint (double-buffered x +
    mask tiles) well under v7x's 32 MiB scoped default while amortizing the
    per-grid-step overhead; larger tiles are fine on v5e/v6e.
    """
    B, D = x.shape
    w1, b1, w2, b2, w3, b3, w4, b4 = params

    if cast_bf16:
        # Only x and w1 dominate HBM traffic; cast just those (f32 accumulate
        # is preserved inside the kernel via preferred_element_type).
        x = x.astype(jnp.bfloat16)
        w1 = w1.astype(jnp.bfloat16)

    TB = min(block_batch, B)
    grid = (pl.cdiv(B, TB),)

    # Batch-tiled operands.
    in_specs = [pl.BlockSpec((TB, D), lambda i: (i, 0))]
    inputs = [x]

    if train:
        if dropout_bits is None:
            dropout_bits = make_dropout_bits(jax.random.PRNGKey(0), B)
        for bits in dropout_bits:
            inputs.append(bits)
            in_specs.append(pl.BlockSpec((TB, bits.shape[1]), lambda i: (i, 0)))

    # Weights / biases: constant index_map -> DMA'd once, resident in VMEM.
    for arr in (w1, b1, w2, b2, w3, b3, w4, b4):
        inputs.append(arr)
        in_specs.append(pl.BlockSpec(arr.shape, lambda i: (0, 0)))

    out_spec = pl.BlockSpec((TB, 1), lambda i: (i, 0))

    kernel = functools.partial(_mlp_kernel, train=train)
    return pl.pallas_call(
        kernel,
        out_shape=jax.ShapeDtypeStruct((B, 1), jnp.float32),
        grid=grid,
        in_specs=in_specs,
        out_specs=out_spec,
        compiler_params=pltpu.CompilerParams(
            dimension_semantics=("parallel",),
        ),
    )(*inputs)


def init_params(key):
    """Deterministic init matching PyTorch nn.Linear shapes (weights transposed)."""
    params = []
    for (fan_in, fan_out) in _LAYER_DIMS:
        key, kw, kb = jax.random.split(key, 3)
        bound = 1.0 / (fan_in ** 0.5)
        w_t = jax.random.uniform(kw, (fan_in, fan_out), jnp.float32, -bound, bound)
        b = jax.random.uniform(kb, (1, fan_out), jnp.float32, -bound, bound)
        params += [w_t, b]
    return params


def reference_forward(x, params, *, dropout_bits=None):
    """Pure-JAX reference.  dropout_bits=None => eval mode (dropout = identity)."""
    w1, b1, w2, b2, w3, b3, w4, b4 = params
    h = x
    if dropout_bits is not None:
        h = _dropout_from_bits(h, dropout_bits[0], _DROP_PS[0])
    h = jnp.maximum(h @ w1 + b1, 0.0)
    if dropout_bits is not None:
        h = _dropout_from_bits(h, dropout_bits[1], _DROP_PS[1])
    h = jnp.maximum(h @ w2 + b2, 0.0)
    if dropout_bits is not None:
        h = _dropout_from_bits(h, dropout_bits[2], _DROP_PS[2])
    h = jnp.maximum(h @ w3 + b3, 0.0)
    if dropout_bits is not None:
        h = _dropout_from_bits(h, dropout_bits[3], _DROP_PS[3])
    return h @ w4 + b4


if __name__ == "__main__":
    key = jax.random.PRNGKey(0)
    kx, kp, kd = jax.random.split(key, 3)

    B, D = 128, 2000
    x = jax.random.normal(kx, (B, D), jnp.float32)
    params = init_params(kp)

    # --- eval mode (PyTorch .eval(): dropout = identity), exact f32 path ---
    out = jax.block_until_ready(
        dropout_net_relu(x, params, train=False, block_batch=32))
    ref = reference_forward(x, params)
    assert out.shape == (B, 1)
    assert jnp.allclose(out, ref, atol=1e-4, rtol=1e-4), "eval f32 mismatch"

    # --- eval mode, bf16 x/w1 fast path (halves the dominant HBM read) ---
    out_bf16 = jax.block_until_ready(
        dropout_net_relu(x, params, train=False, block_batch=32, cast_bf16=True))
    assert jnp.allclose(out_bf16, ref, atol=5e-2, rtol=5e-2), "eval bf16 mismatch"

    # --- train mode: inverted dropout from host-generated uint32 bits ---
    bits = make_dropout_bits(kd, B)
    out_tr = jax.block_until_ready(
        dropout_net_relu(x, params, train=True, dropout_bits=bits, block_batch=32))
    ref_tr = reference_forward(x, params, dropout_bits=bits)
    assert out_tr.shape == (B, 1)
    assert jnp.allclose(out_tr, ref_tr, atol=1e-4, rtol=1e-4), "train mismatch"

    print("KERNEL_OK")
</pallas_src>

<mosaic_0001>
module attributes {stable_mosaic.version = 11 : i64} {
  func.func @_mlp_kernel(%arg0: i32, %arg1: memref<32x2000xf32, #tpu.memory_space<vmem>>, %arg2: memref<2000x6xf32, #tpu.memory_space<vmem>>, %arg3: memref<1x6xf32, #tpu.memory_space<vmem>>, %arg4: memref<6x4xf32, #tpu.memory_space<vmem>>, %arg5: memref<1x4xf32, #tpu.memory_space<vmem>>, %arg6: memref<4x3xf32, #tpu.memory_space<vmem>>, %arg7: memref<1x3xf32, #tpu.memory_space<vmem>>, %arg8: memref<3x1xf32, #tpu.memory_space<vmem>>, %arg9: memref<1x1xf32, #tpu.memory_space<vmem>>, %arg10: memref<32x1xf32, #tpu.memory_space<vmem>>) attributes {dimension_semantics = [#tpu.dimension_semantics<parallel>], iteration_bounds = array<i64: 4>, scalar_prefetch = 0 : i64, scratch_operands = 0 : i64, tpu.core_type = #tpu.core_type<tc>, window_params = [{transform_indices = @transform_0, window_bounds = array<i64: 32, 2000>}, {pipeline_mode = #tpu.pipeline_mode<synchronous>, transform_indices = @transform_1, window_bounds = array<i64: 2000, 6>}, {pipeline_mode = #tpu.pipeline_mode<synchronous>, transform_indices = @transform_2, window_bounds = array<i64: 1, 6>}, {pipeline_mode = #tpu.pipeline_mode<synchronous>, transform_indices = @transform_3, window_bounds = array<i64: 6, 4>}, {pipeline_mode = #tpu.pipeline_mode<synchronous>, transform_indices = @transform_4, window_bounds = array<i64: 1, 4>}, {pipeline_mode = #tpu.pipeline_mode<synchronous>, transform_indices = @transform_5, window_bounds = array<i64: 4, 3>}, {pipeline_mode = #tpu.pipeline_mode<synchronous>, transform_indices = @transform_6, window_bounds = array<i64: 1, 3>}, {pipeline_mode = #tpu.pipeline_mode<synchronous>, transform_indices = @transform_7, window_bounds = array<i64: 3, 1>}, {pipeline_mode = #tpu.pipeline_mode<synchronous>, transform_indices = @transform_8, window_bounds = array<i64: 1, 1>}, {transform_indices = @transform_9, window_bounds = array<i64: 32, 1>}]} {
    %c0 = arith.constant 0 : index
    %c0_0 = arith.constant 0 : index
    %0 = vector.load %arg1[%c0, %c0_0] : memref<32x2000xf32, #tpu.memory_space<vmem>>, vector<32x2000xf32>
    %c0_1 = arith.constant 0 : index
    %c0_2 = arith.constant 0 : index
    %1 = vector.load %arg2[%c0_1, %c0_2] : memref<2000x6xf32, #tpu.memory_space<vmem>>, vector<2000x6xf32>
    %cst = arith.constant dense<0.000000e+00> : vector<32x6xf32>
    %2 = tpu.matmul %0, %1, %cst {dimension_numbers = #tpu.dot_dimension_numbers<[1], [0], [0], [1], [0, 0, 1, 1], [], []>} : vector<32x2000xf32>, vector<2000x6xf32>, vector<32x6xf32> -> vector<32x6xf32>
    %c0_3 = arith.constant 0 : index
    %c0_4 = arith.constant 0 : index
    %3 = vector.load %arg3[%c0_3, %c0_4] : memref<1x6xf32, #tpu.memory_space<vmem>>, vector<1x6xf32>
    %4 = vector.broadcast %3 : vector<1x6xf32> to vector<32x6xf32>
    %5 = arith.addf %2, %4 : vector<32x6xf32>
    %cst_5 = arith.constant 0.000000e+00 : f32
    %6 = vector.broadcast %cst_5 : f32 to vector<32x6xf32>
    %7 = arith.maximumf %5, %6 : vector<32x6xf32>
    %c0_6 = arith.constant 0 : index
    %c0_7 = arith.constant 0 : index
    %8 = vector.load %arg4[%c0_6, %c0_7] : memref<6x4xf32, #tpu.memory_space<vmem>>, vector<6x4xf32>
    %cst_8 = arith.constant dense<0.000000e+00> : vector<32x4xf32>
    %9 = tpu.matmul %7, %8, %cst_8 {dimension_numbers = #tpu.dot_dimension_numbers<[1], [0], [0], [1], [0, 0, 1, 1], [], []>} : vector<32x6xf32>, vector<6x4xf32>, vector<32x4xf32> -> vector<32x4xf32>
    %c0_9 = arith.constant 0 : index
    %c0_10 = arith.constant 0 : index
    %10 = vector.load %arg5[%c0_9, %c0_10] : memref<1x4xf32, #tpu.memory_space<vmem>>, vector<1x4xf32>
    %11 = vector.broadcast %10 : vector<1x4xf32> to vector<32x4xf32>
    %12 = arith.addf %9, %11 : vector<32x4xf32>
    %cst_11 = arith.constant 0.000000e+00 : f32
    %13 = vector.broadcast %cst_11 : f32 to vector<32x4xf32>
    %14 = arith.maximumf %12, %13 : vector<32x4xf32>
    %c0_12 = arith.constant 0 : index
    %c0_13 = arith.constant 0 : index
    %15 = vector.load %arg6[%c0_12, %c0_13] : memref<4x3xf32, #tpu.memory_space<vmem>>, vector<4x3xf32>
    %cst_14 = arith.constant dense<0.000000e+00> : vector<32x3xf32>
    %16 = tpu.matmul %14, %15, %cst_14 {dimension_numbers = #tpu.dot_dimension_numbers<[1], [0], [0], [1], [0, 0, 1, 1], [], []>} : vector<32x4xf32>, vector<4x3xf32>, vector<32x3xf32> -> vector<32x3xf32>
    %c0_15 = arith.constant 0 : index
    %c0_16 = arith.constant 0 : index
    %17 = vector.load %arg7[%c0_15, %c0_16] : memref<1x3xf32, #tpu.memory_space<vmem>>, vector<1x3xf32>
    %18 = vector.broadcast %17 : vector<1x3xf32> to vector<32x3xf32>
    %19 = arith.addf %16, %18 : vector<32x3xf32>
    %cst_17 = arith.constant 0.000000e+00 : f32
    %20 = vector.broadcast %cst_17 : f32 to vector<32x3xf32>
    %21 = arith.maximumf %19, %20 : vector<32x3xf32>
    %c0_18 = arith.constant 0 : index
    %c0_19 = arith.constant 0 : index
    %22 = vector.load %arg8[%c0_18, %c0_19] : memref<3x1xf32, #tpu.memory_space<vmem>>, vector<3x1xf32>
    %cst_20 = arith.constant dense<0.000000e+00> : vector<32x1xf32>
    %23 = tpu.matmul %21, %22, %cst_20 {dimension_numbers = #tpu.dot_dimension_numbers<[1], [0], [0], [1], [0, 0, 1, 1], [], []>} : vector<32x3xf32>, vector<3x1xf32>, vector<32x1xf32> -> vector<32x1xf32>
    %c0_21 = arith.constant 0 : index
    %c0_22 = arith.constant 0 : index
    %24 = vector.load %arg9[%c0_21, %c0_22] : memref<1x1xf32, #tpu.memory_space<vmem>>, vector<1x1xf32>
    %25 = vector.broadcast %24 : vector<1x1xf32> to vector<32x1xf32>
    %26 = arith.addf %23, %25 : vector<32x1xf32>
    %c0_23 = arith.constant 0 : index
    %c0_24 = arith.constant 0 : index
    %27 = vector.load %arg10[%c0_23, %c0_24] : memref<32x1xf32, #tpu.memory_space<vmem>>, vector<32x1xf32>
    tpu.vector_store %arg10[%c0_23, %c0_24], %26 {strides = array<i32>} : memref<32x1xf32, #tpu.memory_space<vmem>>, vector<32x1xf32>,
    return
  }
  func.func @transform_0(%arg0: i32) -> (i32, i32) {
    %c0_i32 = arith.constant 0 : i32
    %c0_i32_0 = arith.constant 0 : i32
    return %arg0, %c0_i32 : i32, i32
  }
  func.func @transform_1(%arg0: i32) -> (i32, i32) {
    %c0_i32 = arith.constant 0 : i32
    %c0_i32_0 = arith.constant 0 : i32
    %c0_i32_1 = arith.constant 0 : i32
    return %c0_i32, %c0_i32_0 : i32, i32
  }
  func.func @transform_2(%arg0: i32) -> (i32, i32) {
    %c0_i32 = arith.constant 0 : i32
    %c0_i32_0 = arith.constant 0 : i32
    %c0_i32_1 = arith.constant 0 : i32
    return %c0_i32, %c0_i32_0 : i32, i32
  }
  func.func @transform_3(%arg0: i32) -> (i32, i32) {
    %c0_i32 = arith.constant 0 : i32
    %c0_i32_0 = arith.constant 0 : i32
    %c0_i32_1 = arith.constant 0 : i32
    return %c0_i32, %c0_i32_0 : i32, i32
  }
  func.func @transform_4(%arg0: i32) -> (i32, i32) {
    %c0_i32 = arith.constant 0 : i32
    %c0_i32_0 = arith.constant 0 : i32
    %c0_i32_1 = arith.constant 0 : i32
    return %c0_i32, %c0_i32_0 : i32, i32
  }
  func.func @transform_5(%arg0: i32) -> (i32, i32) {
    %c0_i32 = arith.constant 0 : i32
    %c0_i32_0 = arith.constant 0 : i32
    %c0_i32_1 = arith.constant 0 : i32
    return %c0_i32, %c0_i32_0 : i32, i32
  }
  func.func @transform_6(%arg0: i32) -> (i32, i32) {
    %c0_i32 = arith.constant 0 : i32
    %c0_i32_0 = arith.constant 0 : i32
    %c0_i32_1 = arith.constant 0 : i32
    return %c0_i32, %c0_i32_0 : i32, i32
  }
  func.func @transform_7(%arg0: i32) -> (i32, i32) {
    %c0_i32 = arith.constant 0 : i32
    %c0_i32_0 = arith.constant 0 : i32
    %c0_i32_1 = arith.constant 0 : i32
    return %c0_i32, %c0_i32_0 : i32, i32
  }
  func.func @transform_8(%arg0: i32) -> (i32, i32) {
    %c0_i32 = arith.constant 0 : i32
    %c0_i32_0 = arith.constant 0 : i32
    %c0_i32_1 = arith.constant 0 : i32
    return %c0_i32, %c0_i32_0 : i32, i32
  }
  func.func @transform_9(%arg0: i32) -> (i32, i32) {
    %c0_i32 = arith.constant 0 : i32
    %c0_i32_0 = arith.constant 0 : i32
    return %arg0, %c0_i32 : i32, i32
  }
}

</mosaic_0001>

<bundles_post_ra>
// kernel: tpu_custom_call.1
= control target key start
LH: loop header
LB: loop body
LE: loop exit
PB: predicated region body
PF: predicated region fallthrough
CT: control target
= control target key end

     0   :  { %s1485_s11 = smov 0   ;;  %s2362_s0 = inlined_call_operand.vmem [shape: f32[128,2000], index: 0, kind: input, shape index: {}]   ;;  %s2363_s1 = inlined_call_operand.vmem [shape: f32[2000,6], index: 1, kind: input, shape index: {}]   ;;  %s2364_s2 = inlined_call_operand.vmem [shape: f32[1,6], index: 2, kind: input, shape index: {}]   ;;  %s2365_s3 = inlined_call_operand.vmem [shape: f32[6,4], index: 3, kind: input, shape index: {}]   ;;  %s2366_s4 = inlined_call_operand.vmem [shape: f32[1,4], index: 4, kind: input, shape index: {}]   ;;  %s2367_s5 = inlined_call_operand.vmem [shape: f32[4,3], index: 5, kind: input, shape index: {}]   ;;  %s2368_s6 = inlined_call_operand.vmem [shape: f32[1,3], index: 6, kind: input, shape index: {}]   ;;  %s2369_s7 = inlined_call_operand.vmem [shape: f32[3,1], index: 7, kind: input, shape index: {}]   ;;  %s2370_s8 = inlined_call_operand.<no memory space> [shape: f32[1,1], index: 8, kind: input, shape index: {}]   ;;  %s2371_s9 = inlined_call_operand.vmem [shape: f32[128,1], index: 9, kind: output, shape index: {}]  }
   0x1   :  { %v14_v0 = vstv %s2370_s8 }
   0x2   :  { %15 = vst [vmem:[#allocation2] sm:$0x1] %v14_v0 }
   0x3 LB: > { %s1362_s12 = sadd.s32 4294967295, %s1430_s11   ;;  %p1366_p0 = scmp.ge.s32.totalorder %s1430_s11, 1  ;;  %s1430_s11 = sphi %s1485_s11, %s21_s11  }
   0x4   : > { %p291_p1 = scmp.lt.s32.totalorder %s1430_s11, 5 }
   0x6   : > { %p292_p2 = pnand %p1366_p0, %p291_p1 }
   0x7   : > { %s1591_s16 = sshll.u32 (!%p292_p2), %s1362_s12, 2 }
   0x8   : > { %295 = sbr.rel (%p292_p2) target bundleno = 747 (0x2eb), region = 56  ;;  %p329_p3 = scmp.lt.s32.totalorder (!%p292_p2), %s1591_s16, 15 }
   0xd   : > { %v420_v1 = vld [vmem:[%s2363_s1 + $0x78] sm:$0xff]  ;;  %v419_v5 = vld [vmem:[%s2363_s1 + $0x70] sm:$0xff]  ;;  %v418_v9 = vld [vmem:[%s2363_s1 + $0x68] sm:$0xff]  ;;  %s2373_s16 = smov (!%p329_p3, %s1591_s16), 15  ;;  %vm659_vm0 = vcmask 654336   ;;  %vm1158_vm1 = vcmask 1045504  }
   0xe   : > { %v436_v2 = vld [vmem:[%s2363_s1 + $0xf8] sm:$0xff]  ;;  %672 = vmatpush.msra.mxu0 %v420_v1  ;;  %v435_v6 = vld [vmem:[%s2363_s1 + $0xf0] sm:$0xff]  ;;  %v434_v10 = vld [vmem:[%s2363_s1 + $0xe8] sm:$0xff]  ;;  %s1393_s21 = sshll.u32 %s2373_s16, 7  ;;  %vm1213_vm2 = vcmask 1043456   ;;  %vm1145_vm3 = vcmask 48128  }
   0xf   : > { %v452_v3 = vld [vmem:[%s2363_s1 + $0x178] sm:$0xff]  ;;  %701 = vmatpush.msra.mxu1 %v436_v2  ;;  %v451_v7 = vld [vmem:[%s2363_s1 + $0x170] sm:$0xff]  ;;  %v450_v11 = vld [vmem:[%s2363_s1 + $0x168] sm:$0xff]  ;;  %s1687_s15 = scalar_lea.vmem %s2362_s0, %s1393_s21  ;;  %vm1268_vm4 = vcmask 1042432   ;;  %vm1200_vm5 = vcmask 31744   ;;  %vm1255_vm6 = vcmask 23552  }
  0x10   : > { %v468_v4 = vld [vmem:[%s2363_s1 + $0x1f8] sm:$0xff]  ;;  %730 = vmatpush.msra.mxu2 %v452_v3  ;;  %v467_v8 = vld [vmem:[%s2363_s1 + $0x1f0] sm:$0xff]  ;;  %673 = vmatpush.msra.mxu0 %v419_v5  ;;  %v466_v12 = vld [vmem:[%s2363_s1 + $0x1e8] sm:$0xff]  ;;  %s1371_s27 = sshll.u32 %s2373_s16, 3  ;;  %vm1301_vm7 = vcmask 7168  }
  0x11   : > { %759 = vmatpush.msra.mxu3 %v468_v4  ;;  %702 = vmatpush.msra.mxu1 %v435_v6  ;;  %v417_v13 = vld [vmem:[%s2363_s1 + $0x60] sm:$0xff]  ;;  %v416_v17 = vld [vmem:[%s2363_s1 + $0x58] sm:$0xff]  ;;  %v415_v21 = vld [vmem:[%s2363_s1 + $0x50] sm:$0xff]  ;;  %s339_s30 = scalar_lea.vmem %s2371_s9, %s1371_s27 }
  0x12   : > { %731 = vmatpush.msra.mxu2 %v451_v7  ;;  %v433_v14 = vld [vmem:[%s2363_s1 + $0xe0] sm:$0xff]  ;;  %674 = vmatpush.msra.mxu0 %v418_v9  ;;  %v432_v18 = vld [vmem:[%s2363_s1 + $0xd8] sm:$0xff]  ;;  %v431_v22 = vld [vmem:[%s2363_s1 + $0xd0] sm:$0xff] }
  0x13   : > { %760 = vmatpush.msra.mxu3 %v467_v8  ;;  %703 = vmatpush.msra.mxu1 %v434_v10  ;;  %v449_v15 = vld [vmem:[%s2363_s1 + $0x160] sm:$0xff]  ;;  %v448_v19 = vld [vmem:[%s2363_s1 + $0x158] sm:$0xff]  ;;  %v447_v23 = vld [vmem:[%s2363_s1 + $0x150] sm:$0xff] }
  0x14   : > { %v465_v16 = vld [vmem:[%s2363_s1 + $0x1e0] sm:$0xff]  ;;  %732 = vmatpush.msra.mxu2 %v450_v11  ;;  %675 = vmatpush.msra.mxu0 %v417_v13  ;;  %v464_v20 = vld [vmem:[%s2363_s1 + $0x1d8] sm:$0xff]  ;;  %v463_v24 = vld [vmem:[%s2363_s1 + $0x1d0] sm:$0xff] }
  0x15   : > { %761 = vmatpush.msra.mxu3 %v466_v12  ;;  %704 = vmatpush.msra.mxu1 %v433_v14  ;;  %v414_v25 = vld [vmem:[%s2363_s1 + $0x48] sm:$0xff]  ;;  %v413_v29 = vld [vmem:[%s2363_s1 + $0x40] sm:$0xff]  ;;  %v412_v33 = vld [vmem:[%s2363_s1 + $0x38] sm:$0xff] }
  0x16   : > { %733 = vmatpush.msra.mxu2 %v449_v15  ;;  %676 = vmatpush.msra.mxu0 %v416_v17  ;;  %v430_v26 = vld [vmem:[%s2363_s1 + $0xc8] sm:$0xff]  ;;  %v429_v30 = vld [vmem:[%s2363_s1 + $0xc0] sm:$0xff]  ;;  %v428_v34 = vld [vmem:[%s2363_s1 + $0xb8] sm:$0xff] }
  0x17   : > { %762 = vmatpush.msra.mxu3 %v465_v16  ;;  %705 = vmatpush.msra.mxu1 %v432_v18  ;;  %v446_v27 = vld [vmem:[%s2363_s1 + $0x148] sm:$0xff]  ;;  %v445_v31 = vld [vmem:[%s2363_s1 + $0x140] sm:$0xff]  ;;  %v444_v35 = vld [vmem:[%s2363_s1 + $0x138] sm:$0xff] }
  0x18   : > { %734 = vmatpush.msra.mxu2 %v448_v19  ;;  %677 = vmatpush.msra.mxu0 %v415_v21  ;;  %v462_v28 = vld [vmem:[%s2363_s1 + $0x1c8] sm:$0xff]  ;;  %v461_v32 = vld [vmem:[%s2363_s1 + $0x1c0] sm:$0xff]  ;;  %v460_v36 = vld [vmem:[%s2363_s1 + $0x1b8] sm:$0xff] }
  0x19   : > { %763 = vmatpush.msra.mxu3 %v464_v20  ;;  %706 = vmatpush.msra.mxu1 %v431_v22  ;;  %v411_v37 = vld [vmem:[%s2363_s1 + $0x30] sm:$0xff]  ;;  %v410_v41 = vld [vmem:[%s2363_s1 + $0x28] sm:$0xff]  ;;  %v409_v45 = vld [vmem:[%s2363_s1 + $0x20] sm:$0xff] }
  0x1a   : > { %735 = vmatpush.msra.mxu2 %v447_v23  ;;  %678 = vmatpush.msra.mxu0 %v414_v25  ;;  %v427_v38 = vld [vmem:[%s2363_s1 + $0xb0] sm:$0xff]  ;;  %v426_v42 = vld [vmem:[%s2363_s1 + $0xa8] sm:$0xff]  ;;  %v425_v46 = vld [vmem:[%s2363_s1 + $0xa0] sm:$0xff] }
  0x1b   : > { %764 = vmatpush.msra.mxu3 %v463_v24  ;;  %707 = vmatpush.msra.mxu1 %v430_v26  ;;  %v443_v39 = vld [vmem:[%s2363_s1 + $0x130] sm:$0xff]  ;;  %v442_v43 = vld [vmem:[%s2363_s1 + $0x128] sm:$0xff]  ;;  %v441_v47 = vld [vmem:[%s2363_s1 + $0x120] sm:$0xff] }
  0x1c   : > { %736 = vmatpush.msra.mxu2 %v446_v27  ;;  %679 = vmatpush.msra.mxu0 %v413_v29  ;;  %v459_v40 = vld [vmem:[%s2363_s1 + $0x1b0] sm:$0xff]  ;;  %v458_v44 = vld [vmem:[%s2363_s1 + $0x1a8] sm:$0xff]  ;;  %v457_v48 = vld [vmem:[%s2363_s1 + $0x1a0] sm:$0xff] }
  0x1d   : > { %765 = vmatpush.msra.mxu3 %v462_v28  ;;  %708 = vmatpush.msra.mxu1 %v429_v30  ;;  %v408_v49 = vld [vmem:[%s2363_s1 + $0x18] sm:$0xff]  ;;  %v407_v53 = vld [vmem:[%s2363_s1 + $0x10] sm:$0xff]  ;;  %v406_v57 = vld [vmem:[%s2363_s1 + $0x8] sm:$0xff] }
  0x1e   : > { %737 = vmatpush.msra.mxu2 %v445_v31  ;;  %680 = vmatpush.msra.mxu0 %v412_v33  ;;  %v424_v50 = vld [vmem:[%s2363_s1 + $0x98] sm:$0xff]  ;;  %v423_v54 = vld [vmem:[%s2363_s1 + $0x90] sm:$0xff]  ;;  %v422_v58 = vld [vmem:[%s2363_s1 + $0x88] sm:$0xff] }
  0x1f   : > { %766 = vmatpush.msra.mxu3 %v461_v32  ;;  %709 = vmatpush.msra.mxu1 %v428_v34  ;;  %v440_v51 = vld [vmem:[%s2363_s1 + $0x118] sm:$0xff]  ;;  %v439_v55 = vld [vmem:[%s2363_s1 + $0x110] sm:$0xff]  ;;  %v438_v59 = vld [vmem:[%s2363_s1 + $0x108] sm:$0xff] }
  0x20   : > { %738 = vmatpush.msra.mxu2 %v444_v35  ;;  %681 = vmatpush.msra.mxu0 %v411_v37  ;;  %v456_v52 = vld [vmem:[%s2363_s1 + $0x198] sm:$0xff]  ;;  %v455_v56 = vld [vmem:[%s2363_s1 + $0x190] sm:$0xff]  ;;  %v454_v60 = vld [vmem:[%s2363_s1 + $0x188] sm:$0xff] }
  0x21   : > { %767 = vmatpush.msra.mxu3 %v460_v36  ;;  %710 = vmatpush.msra.mxu1 %v427_v38  ;;  %v405_v61 = vld [vmem:[%s2363_s1] sm:$0xff]  ;;  %v342_v2 = vld [vmem:[%s1687_s15 + $0x8] sm:$0xff]  ;;  %v343_v3 = vld [vmem:[%s1687_s15 + $0x10] sm:$0xff] }
  0x22   : > { %739 = vmatpush.msra.mxu2 %v443_v39  ;;  %682 = vmatpush.msra.mxu0 %v410_v41  ;;  %v421_v62 = vld [vmem:[%s2363_s1 + $0x80] sm:$0xff]  ;;  %v344_v4 = vld [vmem:[%s1687_s15 + $0x18] sm:$0xff]  ;;  %v531_v9 = vld [vmem:[%s2363_s1 + $0x3f0] sm:$0xff] }
  0x23   : > { %768 = vmatpush.msra.mxu3 %v459_v40  ;;  %711 = vmatpush.msra.mxu1 %v426_v42  ;;  %v437_v63 = vld [vmem:[%s2363_s1 + $0x100] sm:$0xff]  ;;  %v532_v5 = vld [vmem:[%s2363_s1 + $0x3f8] sm:$0xff]  ;;  %v483_v10 = vld [vmem:[%s2363_s1 + $0x270] sm:$0xff] }
  0x24   : > { %740 = vmatpush.msra.mxu2 %v442_v43  ;;  %683 = vmatpush.msra.mxu0 %v409_v45  ;;  %v453_v0 = vld [vmem:[%s2363_s1 + $0x180] sm:$0xff]  ;;  %v484_v6 = vld [vmem:[%s2363_s1 + $0x278] sm:$0xff]  ;;  %v499_v11 = vld [vmem:[%s2363_s1 + $0x2f0] sm:$0xff] }
  0x25   : > { %769 = vmatpush.msra.mxu3 %v458_v44  ;;  %712 = vmatpush.msra.mxu1 %v425_v46  ;;  %v341_v1 = vld [vmem:[%s1687_s15] sm:$0xff]  ;;  %v500_v7 = vld [vmem:[%s2363_s1 + $0x2f8] sm:$0xff]  ;;  %v515_v12 = vld [vmem:[%s2363_s1 + $0x370] sm:$0xff] }
  0x26   : > { %741 = vmatpush.msra.mxu2 %v441_v47  ;;  %684 = vmatpush.msra.mxu0 %v408_v49  ;;  %v516_v8 = vld [vmem:[%s2363_s1 + $0x378] sm:$0xff]  ;;  %v530_v13 = vld [vmem:[%s2363_s1 + $0x3e8] sm:$0xff]  ;;  %v529_v17 = vld [vmem:[%s2363_s1 + $0x3e0] sm:$0xff] }
  0x27   : > { %770 = vmatpush.msra.mxu3 %v457_v48  ;;  %713 = vmatpush.msra.mxu1 %v424_v50  ;;  %v482_v14 = vld [vmem:[%s2363_s1 + $0x268] sm:$0xff]  ;;  %v481_v18 = vld [vmem:[%s2363_s1 + $0x260] sm:$0xff]  ;;  %v359_v23 = vld [vmem:[%s1687_s15 + $0x90] sm:$0xff] }
  0x28   : > { %742 = vmatpush.msra.mxu2 %v440_v51  ;;  %685 = vmatpush.msra.mxu0 %v407_v53  ;;  %v498_v15 = vld [vmem:[%s2363_s1 + $0x2e8] sm:$0xff]  ;;  %v497_v19 = vld [vmem:[%s2363_s1 + $0x2e0] sm:$0xff]  ;;  %v360_v24 = vld [vmem:[%s1687_s15 + $0x98] sm:$0xff] }
  0x29   : > { %771 = vmatpush.msra.mxu3 %v456_v52  ;;  %714 = vmatpush.msra.mxu1 %v423_v54  ;;  %v514_v16 = vld [vmem:[%s2363_s1 + $0x368] sm:$0xff]  ;;  %v513_v20 = vld [vmem:[%s2363_s1 + $0x360] sm:$0xff]  ;;  %v528_v25 = vld [vmem:[%s2363_s1 + $0x3d8] sm:$0xff] }
  0x2a   : > { %743 = vmatpush.msra.mxu2 %v439_v55  ;;  %686 = vmatpush.msra.mxu0 %v406_v57  ;;  %v357_v21 = vld [vmem:[%s1687_s15 + $0x80] sm:$0xff]  ;;  %v358_v22 = vld [vmem:[%s1687_s15 + $0x88] sm:$0xff]  ;;  %v480_v26 = vld [vmem:[%s2363_s1 + $0x258] sm:$0xff] }
  0x2b   : > { %772 = vmatpush.msra.mxu3 %v455_v56  ;;  %715 = vmatpush.msra.mxu1 %v422_v58  ;;  %v496_v27 = vld [vmem:[%s2363_s1 + $0x2d8] sm:$0xff]  ;;  %v527_v29 = vld [vmem:[%s2363_s1 + $0x3d0] sm:$0xff]  ;;  %v526_v33 = vld [vmem:[%s2363_s1 + $0x3c8] sm:$0xff] }
  0x2c   : > { %744 = vmatpush.msra.mxu2 %v438_v59  ;;  %687 = vmatpush.msra.mxu0 %v405_v61  ;;  %v512_v28 = vld [vmem:[%s2363_s1 + $0x358] sm:$0xff]  ;;  %v479_v30 = vld [vmem:[%s2363_s1 + $0x250] sm:$0xff]  ;;  %v478_v34 = vld [vmem:[%s2363_s1 + $0x248] sm:$0xff] }
  0x2d   : > { %773 = vmatpush.msra.mxu3 %v454_v60  ;;  %716 = vmatpush.msra.mxu1 %v421_v62  ;;  %v495_v31 = vld [vmem:[%s2363_s1 + $0x2d0] sm:$0xff]  ;;  %v494_v35 = vld [vmem:[%s2363_s1 + $0x2c8] sm:$0xff]  ;;  %v525_v37 = vld [vmem:[%s2363_s1 + $0x3c0] sm:$0xff] }
  0x2e   : > { %745 = vmatpush.msra.mxu2 %v437_v63  ;;  %688 = vmatmul.f32.vlgmr.msra.gmra.mxu0 %v341_v1  ;;  %v511_v32 = vld [vmem:[%s2363_s1 + $0x350] sm:$0xff]  ;;  %v510_v36 = vld [vmem:[%s2363_s1 + $0x348] sm:$0xff]  ;;  %v477_v38 = vld [vmem:[%s2363_s1 + $0x240] sm:$0xff] }
  0x2f   : > { %774 = vmatpush.msra.mxu3 %v453_v0  ;;  %717 = vmatmul.f32.vlgmr.msra.gmra.mxu1 %v342_v2  ;;  %v493_v39 = vld [vmem:[%s2363_s1 + $0x2c0] sm:$0xff]  ;;  %v374_v42 = vld [vmem:[%s1687_s15 + $0x108] sm:$0xff]  ;;  %v375_v43 = vld [vmem:[%s1687_s15 + $0x110] sm:$0xff] }
  0x30   : > { %746 = vmatmul.f32.vlgmr.msra.gmra.mxu2 %v343_v3  ;;  %775 = vmatmul.f32.vlgmr.msra.gmra.mxu3 %v344_v4  ;;  %v509_v40 = vld [vmem:[%s2363_s1 + $0x340] sm:$0xff]  ;;  %v376_v44 = vld [vmem:[%s1687_s15 + $0x118] sm:$0xff]  ;;  %v523_v49 = vld [vmem:[%s2363_s1 + $0x3b0] sm:$0xff] }
  0x31   : > { %875 = vmatpush.msrb.mxu3 %v532_v5  ;;  %788 = vmatpush.msrb.mxu0 %v484_v6  ;;  %v373_v41 = vld [vmem:[%s1687_s15 + $0x100] sm:$0xff]  ;;  %v524_v45 = vld [vmem:[%s2363_s1 + $0x3b8] sm:$0xff]  ;;  %v475_v50 = vld [vmem:[%s2363_s1 + $0x230] sm:$0xff] }
  0x32   : > { %817 = vmatpush.msrb.mxu1 %v500_v7  ;;  %846 = vmatpush.msrb.mxu2 %v516_v8  ;;  %v476_v46 = vld [vmem:[%s2363_s1 + $0x238] sm:$0xff]  ;;  %v491_v51 = vld [vmem:[%s2363_s1 + $0x2b0] sm:$0xff]  ;;  %v522_v53 = vld [vmem:[%s2363_s1 + $0x3a8] sm:$0xff] }
  0x33   : > { %876 = vmatpush.msrb.mxu3 %v531_v9  ;;  %789 = vmatpush.msrb.mxu0 %v483_v10  ;;  %v492_v47 = vld [vmem:[%s2363_s1 + $0x2b8] sm:$0xff]  ;;  %v507_v52 = vld [vmem:[%s2363_s1 + $0x330] sm:$0xff]  ;;  %v474_v54 = vld [vmem:[%s2363_s1 + $0x228] sm:$0xff] }
  0x34   : > { %818 = vmatpush.msrb.mxu1 %v499_v11  ;;  %847 = vmatpush.msrb.mxu2 %v515_v12  ;;  %v508_v48 = vld [vmem:[%s2363_s1 + $0x338] sm:$0xff]  ;;  %v490_v55 = vld [vmem:[%s2363_s1 + $0x2a8] sm:$0xff]  ;;  %v521_v57 = vld [vmem:[%s2363_s1 + $0x3a0] sm:$0xff] }
  0x35   : > { %877 = vmatpush.msrb.mxu3 %v530_v13  ;;  %790 = vmatpush.msrb.mxu0 %v482_v14  ;;  %v506_v56 = vld [vmem:[%s2363_s1 + $0x328] sm:$0xff]  ;;  %v473_v58 = vld [vmem:[%s2363_s1 + $0x220] sm:$0xff]  ;;  %v391_v63 = vld [vmem:[%s1687_s15 + $0x190] sm:$0xff] }
  0x36   : > { %819 = vmatpush.msrb.mxu1 %v498_v15  ;;  %848 = vmatpush.msrb.mxu2 %v514_v16  ;;  %v489_v59 = vld [vmem:[%s2363_s1 + $0x2a0] sm:$0xff]  ;;  %v390_v62 = vld [vmem:[%s1687_s15 + $0x188] sm:$0xff]  ;;  %v392_v0 = vld [vmem:[%s1687_s15 + $0x198] sm:$0xff] }
  0x37   : > { %878 = vmatpush.msrb.mxu3 %v529_v17  ;;  %791 = vmatpush.msrb.mxu0 %v481_v18  ;;  %v505_v60 = vld [vmem:[%s2363_s1 + $0x320] sm:$0xff]  ;;  %v520_v1 = vld [vmem:[%s2363_s1 + $0x398] sm:$0xff]  ;;  %v519_v5 = vld [vmem:[%s2363_s1 + $0x390] sm:$0xff] }
  0x38   : > { %820 = vmatpush.msrb.mxu1 %v497_v19  ;;  %849 = vmatpush.msrb.mxu2 %v513_v20  ;;  %v389_v61 = vld [vmem:[%s1687_s15 + $0x180] sm:$0xff]  ;;  %v472_v2 = vld [vmem:[%s2363_s1 + $0x218] sm:$0xff]  ;;  %v471_v6 = vld [vmem:[%s2363_s1 + $0x210] sm:$0xff] }
  0x39   : > { %691 = vmatmul.f32.gmra.mxu0 %v357_v21  ;;  %720 = vmatmul.f32.gmra.mxu1 %v358_v22  ;;  %v488_v3 = vld [vmem:[%s2363_s1 + $0x298] sm:$0xff]  ;;  %v487_v7 = vld [vmem:[%s2363_s1 + $0x290] sm:$0xff]  ;;  %v518_v9 = vld [vmem:[%s2363_s1 + $0x388] sm:$0xff] }
  0x3a   : > { %749 = vmatmul.f32.gmra.mxu2 %v359_v23  ;;  %778 = vmatmul.f32.gmra.mxu3 %v360_v24  ;;  %v504_v4 = vld [vmem:[%s2363_s1 + $0x318] sm:$0xff]  ;;  %v503_v8 = vld [vmem:[%s2363_s1 + $0x310] sm:$0xff]  ;;  %v470_v10 = vld [vmem:[%s2363_s1 + $0x208] sm:$0xff] }
  0x3b   : > { %879 = vmatpush.msrb.mxu3 %v528_v25  ;;  %792 = vmatpush.msrb.mxu0 %v480_v26  ;;  %v486_v11 = vld [vmem:[%s2363_s1 + $0x288] sm:$0xff]  ;;  %v517_v13 = vld [vmem:[%s2363_s1 + $0x380] sm:$0xff]  ;;  %v347_v19 = vld [vmem:[%s1687_s15 + $0x30] sm:$0xff] }
  0x3c   : > { %821 = vmatpush.msrb.mxu1 %v496_v27  ;;  %850 = vmatpush.msrb.mxu2 %v512_v28  ;;  %v502_v12 = vld [vmem:[%s2363_s1 + $0x308] sm:$0xff]  ;;  %v469_v14 = vld [vmem:[%s2363_s1 + $0x200] sm:$0xff]  ;;  %v348_v20 = vld [vmem:[%s1687_s15 + $0x38] sm:$0xff] }
  0x3d   : > { %880 = vmatpush.msrb.mxu3 %v527_v29  ;;  %793 = vmatpush.msrb.mxu0 %v479_v30  ;;  %v485_v15 = vld [vmem:[%s2363_s1 + $0x280] sm:$0xff]  ;;  %v346_v18 = vld [vmem:[%s1687_s15 + $0x28] sm:$0xff]  ;;  %v596_v21 = vld [vmem:[%s2363_s1 + $0x5f8] sm:$0xff] }
  0x3e   : > { %822 = vmatpush.msrb.mxu1 %v495_v31  ;;  %851 = vmatpush.msrb.mxu2 %v511_v32  ;;  %v501_v16 = vld [vmem:[%s2363_s1 + $0x300] sm:$0xff]  ;;  %v548_v22 = vld [vmem:[%s2363_s1 + $0x478] sm:$0xff]  ;;  %v595_v25 = vld [vmem:[%s2363_s1 + $0x5f0] sm:$0xff] }
  0x3f   : > { %881 = vmatpush.msrb.mxu3 %v526_v33  ;;  %794 = vmatpush.msrb.mxu0 %v478_v34  ;;  %v345_v17 = vld [vmem:[%s1687_s15 + $0x20] sm:$0xff]  ;;  %v564_v23 = vld [vmem:[%s2363_s1 + $0x4f8] sm:$0xff]  ;;  %v547_v26 = vld [vmem:[%s2363_s1 + $0x470] sm:$0xff] }
  0x40   : > { %823 = vmatpush.msrb.mxu1 %v494_v35  ;;  %852 = vmatpush.msrb.mxu2 %v510_v36  ;;  %v580_v24 = vld [vmem:[%s2363_s1 + $0x578] sm:$0xff]  ;;  %v563_v27 = vld [vmem:[%s2363_s1 + $0x4f0] sm:$0xff]  ;;  %v594_v29 = vld [vmem:[%s2363_s1 + $0x5e8] sm:$0xff] }
  0x41   : > { %882 = vmatpush.msrb.mxu3 %v525_v37  ;;  %795 = vmatpush.msrb.mxu0 %v477_v38  ;;  %v579_v28 = vld [vmem:[%s2363_s1 + $0x570] sm:$0xff]  ;;  %v546_v30 = vld [vmem:[%s2363_s1 + $0x468] sm:$0xff]  ;;  %v593_v33 = vld [vmem:[%s2363_s1 + $0x5e0] sm:$0xff] }
  0x42   : > { %824 = vmatpush.msrb.mxu1 %v493_v39  ;;  %853 = vmatpush.msrb.mxu2 %v509_v40  ;;  %v562_v31 = vld [vmem:[%s2363_s1 + $0x4e8] sm:$0xff]  ;;  %v545_v34 = vld [vmem:[%s2363_s1 + $0x460] sm:$0xff]  ;;  %v363_v39 = vld [vmem:[%s1687_s15 + $0xb0] sm:$0xff] }
  0x43   : > { %694 = vmatmul.f32.gmra.mxu0 %v373_v41  ;;  %723 = vmatmul.f32.gmra.mxu1 %v374_v42  ;;  %v578_v32 = vld [vmem:[%s2363_s1 + $0x568] sm:$0xff]  ;;  %v561_v35 = vld [vmem:[%s2363_s1 + $0x4e0] sm:$0xff]  ;;  %v364_v40 = vld [vmem:[%s1687_s15 + $0xb8] sm:$0xff] }
  0x44   : > { %752 = vmatmul.f32.gmra.mxu2 %v375_v43  ;;  %781 = vmatmul.f32.gmra.mxu3 %v376_v44  ;;  %v577_v36 = vld [vmem:[%s2363_s1 + $0x560] sm:$0xff]  ;;  %v362_v38 = vld [vmem:[%s1687_s15 + $0xa8] sm:$0xff]  ;;  %v592_v41 = vld [vmem:[%s2363_s1 + $0x5d8] sm:$0xff] }
  0x45   : > { %883 = vmatpush.msrb.mxu3 %v524_v45  ;;  %796 = vmatpush.msrb.mxu0 %v476_v46  ;;  %v361_v37 = vld [vmem:[%s1687_s15 + $0xa0] sm:$0xff]  ;;  %v544_v42 = vld [vmem:[%s2363_s1 + $0x458] sm:$0xff]  ;;  %v591_v45 = vld [vmem:[%s2363_s1 + $0x5d0] sm:$0xff] }
  0x46   : > { %825 = vmatpush.msrb.mxu1 %v492_v47  ;;  %854 = vmatpush.msrb.mxu2 %v508_v48  ;;  %v560_v43 = vld [vmem:[%s2363_s1 + $0x4d8] sm:$0xff]  ;;  %v543_v46 = vld [vmem:[%s2363_s1 + $0x450] sm:$0xff] }
  0x47   : > { %884 = vmatpush.msrb.mxu3 %v523_v49  ;;  %797 = vmatpush.msrb.mxu0 %v475_v50  ;;  %v576_v44 = vld [vmem:[%s2363_s1 + $0x558] sm:$0xff]  ;;  %v559_v47 = vld [vmem:[%s2363_s1 + $0x4d0] sm:$0xff]  ;;  %v590_v49 = vld [vmem:[%s2363_s1 + $0x5c8] sm:$0xff] }
  0x48   : > { %826 = vmatpush.msrb.mxu1 %v491_v51  ;;  %855 = vmatpush.msrb.mxu2 %v507_v52  ;;  %v575_v48 = vld [vmem:[%s2363_s1 + $0x550] sm:$0xff]  ;;  %v542_v50 = vld [vmem:[%s2363_s1 + $0x448] sm:$0xff] }
  0x49   : > { %885 = vmatpush.msrb.mxu3 %v522_v53  ;;  %798 = vmatpush.msrb.mxu0 %v474_v54  ;;  %v558_v51 = vld [vmem:[%s2363_s1 + $0x4c8] sm:$0xff]  ;;  %v589_v53 = vld [vmem:[%s2363_s1 + $0x5c0] sm:$0xff] }
  0x4a   : > { %827 = vmatpush.msrb.mxu1 %v490_v55  ;;  %856 = vmatpush.msrb.mxu2 %v506_v56  ;;  %v574_v52 = vld [vmem:[%s2363_s1 + $0x548] sm:$0xff]  ;;  %v541_v54 = vld [vmem:[%s2363_s1 + $0x440] sm:$0xff] }
  0x4b   : > { %886 = vmatpush.msrb.mxu3 %v521_v57  ;;  %799 = vmatpush.msrb.mxu0 %v473_v58  ;;  %v557_v55 = vld [vmem:[%s2363_s1 + $0x4c0] sm:$0xff]  ;;  %v378_v58 = vld [vmem:[%s1687_s15 + $0x128] sm:$0xff] }
  0x4c   : > { %828 = vmatpush.msrb.mxu1 %v489_v59  ;;  %857 = vmatpush.msrb.mxu2 %v505_v60  ;;  %v573_v56 = vld [vmem:[%s2363_s1 + $0x540] sm:$0xff]  ;;  %v379_v59 = vld [vmem:[%s1687_s15 + $0x130] sm:$0xff]  ;;  %v380_v60 = vld [vmem:[%s1687_s15 + $0x138] sm:$0xff] }
  0x4d   : > { %697 = vmatmul.f32.gmra.mxu0 %v389_v61  ;;  %726 = vmatmul.f32.gmra.mxu1 %v390_v62  ;;  %v377_v57 = vld [vmem:[%s1687_s15 + $0x120] sm:$0xff]  ;;  %v588_v61 = vld [vmem:[%s2363_s1 + $0x5b8] sm:$0xff] }
  0x4e   : > { %755 = vmatmul.f32.gmra.mxu2 %v391_v63  ;;  %784 = vmatmul.f32.gmra.mxu3 %v392_v0  ;;  %v540_v62 = vld [vmem:[%s2363_s1 + $0x438] sm:$0xff] }
  0x4f   : > { %887 = vmatpush.msrb.mxu3 %v520_v1  ;;  %800 = vmatpush.msrb.mxu0 %v472_v2  ;;  %v556_v63 = vld [vmem:[%s2363_s1 + $0x4b8] sm:$0xff]  ;;  %v587_v1 = vld [vmem:[%s2363_s1 + $0x5b0] sm:$0xff] }
  0x50   : > { %829 = vmatpush.msrb.mxu1 %v488_v3  ;;  %858 = vmatpush.msrb.mxu2 %v504_v4  ;;  %v572_v0 = vld [vmem:[%s2363_s1 + $0x538] sm:$0xff]  ;;  %v539_v2 = vld [vmem:[%s2363_s1 + $0x430] sm:$0xff] }
  0x51   : > { %888 = vmatpush.msrb.mxu3 %v519_v5  ;;  %801 = vmatpush.msrb.mxu0 %v471_v6  ;;  %v555_v3 = vld [vmem:[%s2363_s1 + $0x4b0] sm:$0xff]  ;;  %v586_v5 = vld [vmem:[%s2363_s1 + $0x5a8] sm:$0xff] }
  0x52   : > { %830 = vmatpush.msrb.mxu1 %v487_v7  ;;  %859 = vmatpush.msrb.mxu2 %v503_v8  ;;  %v571_v4 = vld [vmem:[%s2363_s1 + $0x530] sm:$0xff]  ;;  %v538_v6 = vld [vmem:[%s2363_s1 + $0x428] sm:$0xff] }
  0x53   : > { %889 = vmatpush.msrb.mxu3 %v518_v9  ;;  %802 = vmatpush.msrb.mxu0 %v470_v10  ;;  %v554_v7 = vld [vmem:[%s2363_s1 + $0x4a8] sm:$0xff]  ;;  %v585_v9 = vld [vmem:[%s2363_s1 + $0x5a0] sm:$0xff] }
  0x54   : > { %831 = vmatpush.msrb.mxu1 %v486_v11  ;;  %860 = vmatpush.msrb.mxu2 %v502_v12  ;;  %v570_v8 = vld [vmem:[%s2363_s1 + $0x528] sm:$0xff]  ;;  %v537_v10 = vld [vmem:[%s2363_s1 + $0x420] sm:$0xff] }
  0x55   : > { %890 = vmatpush.msrb.mxu3 %v517_v13  ;;  %803 = vmatpush.msrb.mxu0 %v469_v14  ;;  %v553_v11 = vld [vmem:[%s2363_s1 + $0x4a0] sm:$0xff]  ;;  %v394_v14 = vld [vmem:[%s1687_s15 + $0x1a8] sm:$0xff] }
  0x56   : > { %832 = vmatpush.msrb.mxu1 %v485_v15  ;;  %861 = vmatpush.msrb.mxu2 %v501_v16  ;;  %v569_v12 = vld [vmem:[%s2363_s1 + $0x520] sm:$0xff]  ;;  %v395_v15 = vld [vmem:[%s1687_s15 + $0x1b0] sm:$0xff]  ;;  %v396_v16 = vld [vmem:[%s1687_s15 + $0x1b8] sm:$0xff] }
  0x57   : > { %804 = vmatmul.f32.vlgmr.msrb.gmra.mxu0 %v345_v17  ;;  %833 = vmatmul.f32.vlgmr.msrb.gmra.mxu1 %v346_v18  ;;  %v393_v13 = vld [vmem:[%s1687_s15 + $0x1a0] sm:$0xff]  ;;  %v584_v17 = vld [vmem:[%s2363_s1 + $0x598] sm:$0xff] }
  0x58   : > { %862 = vmatmul.f32.vlgmr.msrb.gmra.mxu2 %v347_v19  ;;  %891 = vmatmul.f32.vlgmr.msrb.gmra.mxu3 %v348_v20  ;;  %v536_v18 = vld [vmem:[%s2363_s1 + $0x418] sm:$0xff] }
  0x59   : > { %991 = vmatpush.msra.mxu3 %v596_v21  ;;  %904 = vmatpush.msra.mxu0 %v548_v22  ;;  %v552_v19 = vld [vmem:[%s2363_s1 + $0x498] sm:$0xff]  ;;  %v583_v21 = vld [vmem:[%s2363_s1 + $0x590] sm:$0xff] }
  0x5a   : > { %933 = vmatpush.msra.mxu1 %v564_v23  ;;  %962 = vmatpush.msra.mxu2 %v580_v24  ;;  %v568_v20 = vld [vmem:[%s2363_s1 + $0x518] sm:$0xff]  ;;  %v535_v22 = vld [vmem:[%s2363_s1 + $0x410] sm:$0xff] }
  0x5b   : > { %992 = vmatpush.msra.mxu3 %v595_v25  ;;  %905 = vmatpush.msra.mxu0 %v547_v26  ;;  %v551_v23 = vld [vmem:[%s2363_s1 + $0x490] sm:$0xff]  ;;  %v582_v25 = vld [vmem:[%s2363_s1 + $0x588] sm:$0xff] }
  0x5c   : > { %934 = vmatpush.msra.mxu1 %v563_v27  ;;  %963 = vmatpush.msra.mxu2 %v579_v28  ;;  %v567_v24 = vld [vmem:[%s2363_s1 + $0x510] sm:$0xff]  ;;  %v534_v26 = vld [vmem:[%s2363_s1 + $0x408] sm:$0xff] }
  0x5d   : > { %993 = vmatpush.msra.mxu3 %v594_v29  ;;  %906 = vmatpush.msra.mxu0 %v546_v30  ;;  %v550_v27 = vld [vmem:[%s2363_s1 + $0x488] sm:$0xff]  ;;  %v581_v29 = vld [vmem:[%s2363_s1 + $0x580] sm:$0xff] }
  0x5e   : > { %935 = vmatpush.msra.mxu1 %v562_v31  ;;  %964 = vmatpush.msra.mxu2 %v578_v32  ;;  %v566_v28 = vld [vmem:[%s2363_s1 + $0x508] sm:$0xff]  ;;  %v533_v30 = vld [vmem:[%s2363_s1 + $0x400] sm:$0xff] }
  0x5f   : > { %994 = vmatpush.msra.mxu3 %v593_v33  ;;  %907 = vmatpush.msra.mxu0 %v545_v34  ;;  %v549_v31 = vld [vmem:[%s2363_s1 + $0x480] sm:$0xff]  ;;  %v350_v34 = vld [vmem:[%s1687_s15 + $0x48] sm:$0xff] }
  0x60   : > { %936 = vmatpush.msra.mxu1 %v561_v35  ;;  %965 = vmatpush.msra.mxu2 %v577_v36  ;;  %v565_v32 = vld [vmem:[%s2363_s1 + $0x500] sm:$0xff]  ;;  %v351_v35 = vld [vmem:[%s1687_s15 + $0x50] sm:$0xff]  ;;  %v352_v36 = vld [vmem:[%s1687_s15 + $0x58] sm:$0xff] }
  0x61   : > { %807 = vmatmul.f32.gmra.mxu0 %v361_v37  ;;  %836 = vmatmul.f32.gmra.mxu1 %v362_v38  ;;  %v349_v33 = vld [vmem:[%s1687_s15 + $0x40] sm:$0xff]  ;;  %v612_v37 = vld [vmem:[%s2363_s1 + $0x678] sm:$0xff] }
  0x62   : > { %865 = vmatmul.f32.gmra.mxu2 %v363_v39  ;;  %894 = vmatmul.f32.gmra.mxu3 %v364_v40  ;;  %v628_v38 = vld [vmem:[%s2363_s1 + $0x6f8] sm:$0xff]  ;;  %v611_v40 = vld [vmem:[%s2363_s1 + $0x670] sm:$0xff] }
  0x63   : > { %995 = vmatpush.msra.mxu3 %v592_v41  ;;  %908 = vmatpush.msra.mxu0 %v544_v42  ;;  %v644_v39 = vld [vmem:[%s2363_s1 + $0x778] sm:$0xff]  ;;  %v627_v41 = vld [vmem:[%s2363_s1 + $0x6f0] sm:$0xff] }
  0x64   : > { %937 = vmatpush.msra.mxu1 %v560_v43  ;;  %966 = vmatpush.msra.mxu2 %v576_v44  ;;  %v643_v42 = vld [vmem:[%s2363_s1 + $0x770] sm:$0xff]  ;;  %v610_v43 = vld [vmem:[%s2363_s1 + $0x668] sm:$0xff] }
  0x65   : > { %996 = vmatpush.msra.mxu3 %v591_v45  ;;  %909 = vmatpush.msra.mxu0 %v543_v46  ;;  %v626_v44 = vld [vmem:[%s2363_s1 + $0x6e8] sm:$0xff]  ;;  %v609_v46 = vld [vmem:[%s2363_s1 + $0x660] sm:$0xff] }
  0x66   : > { %938 = vmatpush.msra.mxu1 %v559_v47  ;;  %967 = vmatpush.msra.mxu2 %v575_v48  ;;  %v642_v45 = vld [vmem:[%s2363_s1 + $0x768] sm:$0xff]  ;;  %v625_v47 = vld [vmem:[%s2363_s1 + $0x6e0] sm:$0xff] }
  0x67   : > { %997 = vmatpush.msra.mxu3 %v590_v49  ;;  %910 = vmatpush.msra.mxu0 %v542_v50  ;;  %v641_v48 = vld [vmem:[%s2363_s1 + $0x760] sm:$0xff]  ;;  %v366_v50 = vld [vmem:[%s1687_s15 + $0xc8] sm:$0xff] }
  0x68   : > { %939 = vmatpush.msra.mxu1 %v558_v51  ;;  %968 = vmatpush.msra.mxu2 %v574_v52  ;;  %v365_v49 = vld [vmem:[%s1687_s15 + $0xc0] sm:$0xff]  ;;  %v367_v51 = vld [vmem:[%s1687_s15 + $0xd0] sm:$0xff]  ;;  %v368_v52 = vld [vmem:[%s1687_s15 + $0xd8] sm:$0xff] }
  0x69   : > { %998 = vmatpush.msra.mxu3 %v589_v53  ;;  %911 = vmatpush.msra.mxu0 %v541_v54  ;;  %v608_v53 = vld [vmem:[%s2363_s1 + $0x658] sm:$0xff] }
  0x6a   : > { %940 = vmatpush.msra.mxu1 %v557_v55  ;;  %969 = vmatpush.msra.mxu2 %v573_v56  ;;  %v624_v54 = vld [vmem:[%s2363_s1 + $0x6d8] sm:$0xff]  ;;  %v607_v56 = vld [vmem:[%s2363_s1 + $0x650] sm:$0xff] }
  0x6b   : > { %810 = vmatmul.f32.gmra.mxu0 %v377_v57  ;;  %839 = vmatmul.f32.gmra.mxu1 %v378_v58  ;;  %v640_v55 = vld [vmem:[%s2363_s1 + $0x758] sm:$0xff]  ;;  %v623_v57 = vld [vmem:[%s2363_s1 + $0x6d0] sm:$0xff] }
  0x6c   : > { %868 = vmatmul.f32.gmra.mxu2 %v379_v59  ;;  %897 = vmatmul.f32.gmra.mxu3 %v380_v60  ;;  %v639_v58 = vld [vmem:[%s2363_s1 + $0x750] sm:$0xff]  ;;  %v606_v59 = vld [vmem:[%s2363_s1 + $0x648] sm:$0xff] }
  0x6d   : > { %999 = vmatpush.msra.mxu3 %v588_v61  ;;  %912 = vmatpush.msra.mxu0 %v540_v62  ;;  %v622_v60 = vld [vmem:[%s2363_s1 + $0x6c8] sm:$0xff]  ;;  %v605_v62 = vld [vmem:[%s2363_s1 + $0x640] sm:$0xff] }
  0x6e   : > { %941 = vmatpush.msra.mxu1 %v556_v63  ;;  %970 = vmatpush.msra.mxu2 %v572_v0  ;;  %v638_v61 = vld [vmem:[%s2363_s1 + $0x748] sm:$0xff]  ;;  %v621_v63 = vld [vmem:[%s2363_s1 + $0x6c0] sm:$0xff] }
  0x6f   : > { %1000 = vmatpush.msra.mxu3 %v587_v1  ;;  %913 = vmatpush.msra.mxu0 %v539_v2  ;;  %v637_v0 = vld [vmem:[%s2363_s1 + $0x740] sm:$0xff]  ;;  %v382_v2 = vld [vmem:[%s1687_s15 + $0x148] sm:$0xff] }
  0x70   : > { %942 = vmatpush.msra.mxu1 %v555_v3  ;;  %971 = vmatpush.msra.mxu2 %v571_v4  ;;  %v381_v1 = vld [vmem:[%s1687_s15 + $0x140] sm:$0xff]  ;;  %v383_v3 = vld [vmem:[%s1687_s15 + $0x150] sm:$0xff]  ;;  %v384_v4 = vld [vmem:[%s1687_s15 + $0x158] sm:$0xff] }
  0x71   : > { %1001 = vmatpush.msra.mxu3 %v586_v5  ;;  %914 = vmatpush.msra.mxu0 %v538_v6  ;;  %v604_v5 = vld [vmem:[%s2363_s1 + $0x638] sm:$0xff] }
  0x72   : > { %943 = vmatpush.msra.mxu1 %v554_v7  ;;  %972 = vmatpush.msra.mxu2 %v570_v8  ;;  %v620_v6 = vld [vmem:[%s2363_s1 + $0x6b8] sm:$0xff]  ;;  %v603_v8 = vld [vmem:[%s2363_s1 + $0x630] sm:$0xff] }
  0x73   : > { %1002 = vmatpush.msra.mxu3 %v585_v9  ;;  %915 = vmatpush.msra.mxu0 %v537_v10  ;;  %v636_v7 = vld [vmem:[%s2363_s1 + $0x738] sm:$0xff]  ;;  %v619_v9 = vld [vmem:[%s2363_s1 + $0x6b0] sm:$0xff] }
  0x74   : > { %944 = vmatpush.msra.mxu1 %v553_v11  ;;  %973 = vmatpush.msra.mxu2 %v569_v12  ;;  %v635_v10 = vld [vmem:[%s2363_s1 + $0x730] sm:$0xff]  ;;  %v602_v11 = vld [vmem:[%s2363_s1 + $0x628] sm:$0xff] }
  0x75   : > { %813 = vmatmul.f32.gmra.mxu0 %v393_v13  ;;  %842 = vmatmul.f32.gmra.mxu1 %v394_v14  ;;  %v618_v12 = vld [vmem:[%s2363_s1 + $0x6a8] sm:$0xff]  ;;  %v601_v14 = vld [vmem:[%s2363_s1 + $0x620] sm:$0xff] }
  0x76   : > { %871 = vmatmul.f32.gmra.mxu2 %v395_v15  ;;  %900 = vmatmul.f32.gmra.mxu3 %v396_v16  ;;  %v634_v13 = vld [vmem:[%s2363_s1 + $0x728] sm:$0xff]  ;;  %v617_v15 = vld [vmem:[%s2363_s1 + $0x6a0] sm:$0xff] }
  0x77   : > { %1003 = vmatpush.msra.mxu3 %v584_v17  ;;  %916 = vmatpush.msra.mxu0 %v536_v18  ;;  %v633_v16 = vld [vmem:[%s2363_s1 + $0x720] sm:$0xff]  ;;  %v398_v18 = vld [vmem:[%s1687_s15 + $0x1c8] sm:$0xff] }
  0x78   : > { %945 = vmatpush.msra.mxu1 %v552_v19  ;;  %974 = vmatpush.msra.mxu2 %v568_v20  ;;  %v397_v17 = vld [vmem:[%s1687_s15 + $0x1c0] sm:$0xff]  ;;  %v399_v19 = vld [vmem:[%s1687_s15 + $0x1d0] sm:$0xff]  ;;  %v400_v20 = vld [vmem:[%s1687_s15 + $0x1d8] sm:$0xff] }
  0x79   : > { %1004 = vmatpush.msra.mxu3 %v583_v21  ;;  %917 = vmatpush.msra.mxu0 %v535_v22  ;;  %v600_v21 = vld [vmem:[%s2363_s1 + $0x618] sm:$0xff] }
  0x7a   : > { %946 = vmatpush.msra.mxu1 %v551_v23  ;;  %975 = vmatpush.msra.mxu2 %v567_v24  ;;  %v616_v22 = vld [vmem:[%s2363_s1 + $0x698] sm:$0xff]  ;;  %v599_v24 = vld [vmem:[%s2363_s1 + $0x610] sm:$0xff] }
  0x7b   : > { %1005 = vmatpush.msra.mxu3 %v582_v25  ;;  %918 = vmatpush.msra.mxu0 %v534_v26  ;;  %v632_v23 = vld [vmem:[%s2363_s1 + $0x718] sm:$0xff]  ;;  %v615_v25 = vld [vmem:[%s2363_s1 + $0x690] sm:$0xff] }
  0x7c   : > { %947 = vmatpush.msra.mxu1 %v550_v27  ;;  %976 = vmatpush.msra.mxu2 %v566_v28  ;;  %v631_v26 = vld [vmem:[%s2363_s1 + $0x710] sm:$0xff]  ;;  %v598_v27 = vld [vmem:[%s2363_s1 + $0x608] sm:$0xff] }
  0x7d   : > { %1006 = vmatpush.msra.mxu3 %v581_v29  ;;  %919 = vmatpush.msra.mxu0 %v533_v30  ;;  %v614_v28 = vld [vmem:[%s2363_s1 + $0x688] sm:$0xff]  ;;  %v597_v30 = vld [vmem:[%s2363_s1 + $0x600] sm:$0xff] }
  0x7e   : > { %948 = vmatpush.msra.mxu1 %v549_v31  ;;  %977 = vmatpush.msra.mxu2 %v565_v32  ;;  %v630_v29 = vld [vmem:[%s2363_s1 + $0x708] sm:$0xff]  ;;  %v613_v31 = vld [vmem:[%s2363_s1 + $0x680] sm:$0xff] }
  0x7f   : > { %920 = vmatmul.f32.vlgmr.msra.gmra.mxu0 %v349_v33  ;;  %949 = vmatmul.f32.vlgmr.msra.gmra.mxu1 %v350_v34  ;;  %v629_v32 = vld [vmem:[%s2363_s1 + $0x700] sm:$0xff] }
  0x80   : > { %978 = vmatmul.f32.vlgmr.msra.gmra.mxu2 %v351_v35  ;;  %1007 = vmatmul.f32.vlgmr.msra.gmra.mxu3 %v352_v36  ;;  %v353_v33 = vld [vmem:[%s1687_s15 + $0x60] sm:$0xff]  ;;  %v354_v35 = vld [vmem:[%s1687_s15 + $0x68] sm:$0xff]  ;;  %v355_v36 = vld [vmem:[%s1687_s15 + $0x70] sm:$0xff] }
  0x81   : > { %1394 = vmatpush.msrb.mxu3 %v612_v37  ;;  %1020 = vmatpush.msrb.mxu0 %v612_v37  ;;  %v369_v34 = vld [vmem:[%s1687_s15 + $0xe0] sm:$0xff]  ;;  %v654_v37 = vld [vmem:[%s2363_s1 + $0x7c8] sm:$0xff] }
  0x82   : > { %1049 = vmatpush.msrb.mxu1 %v628_v38  ;;  %1078 = vmatpush.msrb.mxu2 %v644_v39  ;;  %v653_v38 = vld [vmem:[%s2363_s1 + $0x7c0] sm:$0xff] }
  0x83   : > { %1395 = vmatpush.msrb.mxu3 %v611_v40  ;;  %1021 = vmatpush.msrb.mxu0 %v611_v40  ;;  %v2290_v39 = vld [vmem:[%s2364_s2] ss:$0 sm:$0xff]  ;;  %v652_v40 = vld [vmem:[%s2363_s1 + $0x7b8] sm:$0xff] }
  0x84   : > { %1050 = vmatpush.msrb.mxu1 %v627_v41  ;;  %1079 = vmatpush.msrb.mxu2 %v643_v42  ;;  %v385_v41 = vld [vmem:[%s1687_s15 + $0x160] sm:$0xff] }
  0x85   : > { %1396 = vmatpush.msrb.mxu3 %v610_v43  ;;  %1022 = vmatpush.msrb.mxu0 %v610_v43  ;;  %v370_v43 = vld [vmem:[%s1687_s15 + $0xe8] sm:$0xff] }
  0x86   : > { %1051 = vmatpush.msrb.mxu1 %v626_v44  ;;  %1080 = vmatpush.msrb.mxu2 %v642_v45  ;;  %v371_v44 = vld [vmem:[%s1687_s15 + $0xf0] sm:$0xff] }
  0x87   : > { %1397 = vmatpush.msrb.mxu3 %v609_v46  ;;  %1023 = vmatpush.msrb.mxu0 %v609_v46  ;;  %v651_v46 = vld [vmem:[%s2363_s1 + $0x7b0] sm:$0xff] }
  0x88   : > { %1052 = vmatpush.msrb.mxu1 %v625_v47  ;;  %1081 = vmatpush.msrb.mxu2 %v641_v48 }
  0x89   : > { %923 = vmatmul.f32.gmra.mxu0 %v365_v49  ;;  %952 = vmatmul.f32.gmra.mxu1 %v366_v50  ;;  %v650_v49 = vld [vmem:[%s2363_s1 + $0x7a8] sm:$0xff]  ;;  %v649_v50 = vld [vmem:[%s2363_s1 + $0x7a0] sm:$0xff] }
  0x8a   : > { %981 = vmatmul.f32.gmra.mxu2 %v367_v51  ;;  %1010 = vmatmul.f32.gmra.mxu3 %v368_v52 }
  0x8b   : > { %1398 = vmatpush.msrb.mxu3 %v608_v53  ;;  %1024 = vmatpush.msrb.mxu0 %v608_v53  ;;  %v648_v53 = vld [vmem:[%s2363_s1 + $0x798] sm:$0xff] }
  0x8c   : > { %1053 = vmatpush.msrb.mxu1 %v624_v54  ;;  %1082 = vmatpush.msrb.mxu2 %v640_v55  ;;  %v401_v55 = vld [vmem:[%s1687_s15 + $0x1e0] sm:$0xff] }
  0x8d   : > { %1399 = vmatpush.msrb.mxu3 %v607_v56  ;;  %1025 = vmatpush.msrb.mxu0 %v607_v56  ;;  %v386_v56 = vld [vmem:[%s1687_s15 + $0x168] sm:$0xff] }
  0x8e   : > { %1054 = vmatpush.msrb.mxu1 %v623_v57  ;;  %1083 = vmatpush.msrb.mxu2 %v639_v58  ;;  %v387_v57 = vld [vmem:[%s1687_s15 + $0x170] sm:$0xff] }
  0x8f   : > { %1400 = vmatpush.msrb.mxu3 %v606_v59  ;;  %1026 = vmatpush.msrb.mxu0 %v606_v59  ;;  %v647_v58 = vld [vmem:[%s2363_s1 + $0x790] sm:$0xff] }
  0x90   : > { %1055 = vmatpush.msrb.mxu1 %v622_v60  ;;  %1084 = vmatpush.msrb.mxu2 %v638_v61 }
  0x91   : > { %1401 = vmatpush.msrb.mxu3 %v605_v62  ;;  %1027 = vmatpush.msrb.mxu0 %v605_v62  ;;  %v646_v62 = vld [vmem:[%s2363_s1 + $0x788] sm:$0xff] }
  0x92   : > { %1056 = vmatpush.msrb.mxu1 %v621_v63  ;;  %1085 = vmatpush.msrb.mxu2 %v637_v0 }
  0x93   : > { %926 = vmatmul.f32.gmra.mxu0 %v381_v1  ;;  %955 = vmatmul.f32.gmra.mxu1 %v382_v2  ;;  %v645_v1 = vld [vmem:[%s2363_s1 + $0x780] sm:$0xff]  ;;  %v402_v2 = vld [vmem:[%s1687_s15 + $0x1e8] sm:$0xff] }
  0x94   : > { %984 = vmatmul.f32.gmra.mxu2 %v383_v3  ;;  %1013 = vmatmul.f32.gmra.mxu3 %v384_v4  ;;  %v356_v3 = vld [vmem:[%s1687_s15 + $0x78] sm:$0xff] }
  0x95   : > { %1402 = vmatpush.msrb.mxu3 %v604_v5  ;;  %1028 = vmatpush.msrb.mxu0 %v604_v5 }
  0x96   : > { %1057 = vmatpush.msrb.mxu1 %v620_v6  ;;  %1086 = vmatpush.msrb.mxu2 %v636_v7  ;;  %v403_v6 = vld [vmem:[%s1687_s15 + $0x1f0] sm:$0xff] }
  0x97   : > { %1403 = vmatpush.msrb.mxu3 %v603_v8  ;;  %1029 = vmatpush.msrb.mxu0 %v603_v8 }
  0x98   : > { %1058 = vmatpush.msrb.mxu1 %v619_v9  ;;  %1087 = vmatpush.msrb.mxu2 %v635_v10 }
  0x99   : > { %1404 = vmatpush.msrb.mxu3 %v602_v11  ;;  %1030 = vmatpush.msrb.mxu0 %v602_v11 }
  0x9a   : > { %1059 = vmatpush.msrb.mxu1 %v618_v12  ;;  %1088 = vmatpush.msrb.mxu2 %v634_v13  ;;  %v372_v13 = vld [vmem:[%s1687_s15 + $0xf8] sm:$0xff] }
  0x9b   : > { %1405 = vmatpush.msrb.mxu3 %v601_v14  ;;  %1031 = vmatpush.msrb.mxu0 %v601_v14 }
  0x9c   : > { %1060 = vmatpush.msrb.mxu1 %v617_v15  ;;  %1089 = vmatpush.msrb.mxu2 %v633_v16 }
  0x9d   : > { %929 = vmatmul.f32.gmra.mxu0 %v397_v17  ;;  %958 = vmatmul.f32.gmra.mxu1 %v398_v18 }
  0x9e   : > { %987 = vmatmul.f32.gmra.mxu2 %v399_v19  ;;  %1016 = vmatmul.f32.gmra.mxu3 %v400_v20 }
  0x9f   : > { %1406 = vmatpush.msrb.mxu3 %v600_v21  ;;  %1032 = vmatpush.msrb.mxu0 %v600_v21  ;;  %v388_v21 = vld [vmem:[%s1687_s15 + $0x178] sm:$0xff] }
  0xa0   : > { %1061 = vmatpush.msrb.mxu1 %v616_v22  ;;  %1090 = vmatpush.msrb.mxu2 %v632_v23 }
  0xa1   : > { %1407 = vmatpush.msrb.mxu3 %v599_v24  ;;  %1033 = vmatpush.msrb.mxu0 %v599_v24 }
  0xa2   : > { %1062 = vmatpush.msrb.mxu1 %v615_v25  ;;  %1091 = vmatpush.msrb.mxu2 %v631_v26 }
  0xa3   : > { %1408 = vmatpush.msrb.mxu3 %v598_v27  ;;  %1034 = vmatpush.msrb.mxu0 %v598_v27 }
  0xa4   : > { %1063 = vmatpush.msrb.mxu1 %v614_v28  ;;  %1092 = vmatpush.msrb.mxu2 %v630_v29  ;;  %v404_v28 = vld [vmem:[%s1687_s15 + $0x1f8] sm:$0xff] }
  0xa5   : > { %1409 = vmatpush.msrb.mxu3 %v597_v30  ;;  %1035 = vmatpush.msrb.mxu0 %v597_v30 }
  0xa6   : > { %1064 = vmatpush.msrb.mxu1 %v613_v31  ;;  %1093 = vmatpush.msrb.mxu2 %v629_v32 }
  0xa7   : > { %1036 = vmatmul.f32.vlgmr.msrb.gmra.mxu0 %v353_v33  ;;  %1039 = vmatmul.f32.vlgmr.msrb.gmra.mxu3 %v369_v34 }
  0xa8   : > { %1065 = vmatmul.f32.vlgmr.msrb.gmra.mxu1 %v354_v35  ;;  %1094 = vmatmul.f32.vlgmr.msrb.gmra.mxu2 %v355_v36 }
  0xa9   : > { %1113 = vmatpush.msra.mxu3 %v654_v37 }
  0xab   : > { %1114 = vmatpush.msra.mxu3 %v653_v38  ;;  %v689_v42 = vpop.f32.mrf.mxu0 }
  0xac   : > { %v690_v45 = vadd.f32 %v2290_v39, %v689_v42  ;;  %v718_v47 = vpop.f32.mrf.mxu1 }
  0xad   : > { %1115 = vmatpush.msra.mxu3 %v652_v40 }
  0xae   : > { %v719_v48 = vadd.f32 %v718_v47, %v690_v45 }
  0xaf   : > { %1042 = vmatmul.f32.gmra.mxu3 %v385_v41 }
  0xb0   : > { %1068 = vmatmul.f32.gmra.mxu1 %v370_v43  ;;  %1097 = vmatmul.f32.gmra.mxu2 %v371_v44 }
  0xb1   : > { %1116 = vmatpush.msra.mxu3 %v651_v46 }
  0xb3   : > { %1117 = vmatpush.msra.mxu3 %v650_v49  ;;  %v747_v51 = vpop.f32.mrf.mxu2  ;;  %v776_v52 = vpop.f32.mrf.mxu3 }
  0xb4   : > { %v748_v54 = vadd.f32 %v747_v51, %v719_v48 }
  0xb5   : > { %1118 = vmatpush.msra.mxu3 %v649_v50 }
  0xb6   : > { %v777_v59 = vadd.f32 %v776_v52, %v748_v54  ;;  %v692_v60 = vpop.f32.mrf.mxu0  ;;  %v721_v63 = vpop.f32.mrf.mxu1 }
  0xb7   : > { %1119 = vmatpush.msra.mxu3 %v648_v53  ;;  %v693_v61 = vadd.f32 %v2290_v39, %v692_v60 }
  0xb8   : > { %1045 = vmatmul.f32.gmra.mxu3 %v401_v55  ;;  %1071 = vmatmul.f32.gmra.mxu1 %v386_v56 }
  0xb9   : > { %1100 = vmatmul.f32.gmra.mxu2 %v387_v57  ;;  %1120 = vmatpush.msra.mxu3 %v647_v58  ;;  %v722_v0 = vadd.f32 %v721_v63, %v693_v61 }
  0xbb   : > { %1121 = vmatpush.msra.mxu3 %v646_v62 }
  0xbd   : > { %1122 = vmatpush.msra.mxu3 %v645_v1  ;;  %v750_v4 = vpop.f32.mrf.mxu2  ;;  %v779_v5 = vpop.f32.mrf.mxu3 }
  0xbe   : > { %v751_v7 = vadd.f32 %v750_v4, %v722_v0 }
  0xc0   : > { %1074 = vmatmul.f32.gmra.mxu1 %v402_v2  ;;  %1372 = vmatmul.msk.f32.vlgmr.msra.gmra.mxu3 %vm659_vm0, %v356_v3  ;;  %v780_v8 = vadd.f32 %v779_v5, %v751_v7  ;;  %v695_v9 = vpop.f32.mrf.mxu0  ;;  %v724_v11 = vpop.f32.mrf.mxu1  ;;  %v1140_v5 = vld [vmem:[%s2365_s3] sm:$0x3f] }
  0xc1   : > { %1103 = vmatmul.f32.gmra.mxu2 %v403_v6  ;;  %v696_v10 = vadd.f32 %v2290_v39, %v695_v9  ;;  %1376 = vmatpush.msk.msra.mxu0 %vm1158_vm1, %v1140_v5 }
  0xc3   : > { %v725_v12 = vadd.f32 %v724_v11, %v696_v10 }
  0xc7   : > { %v753_v14 = vpop.f32.mrf.mxu2  ;;  %v782_v15 = vpop.f32.mrf.mxu3 }
  0xc8   : > { %1373 = vmatmul.msk.f32.gmra.mxu3 %vm659_vm0, %v372_v13  ;;  %v754_v16 = vadd.f32 %v753_v14, %v725_v12 }
  0xca   : > { %v783_v17 = vadd.f32 %v782_v15, %v754_v16  ;;  %v698_v18 = vpop.f32.mrf.mxu0  ;;  %v727_v20 = vpop.f32.mrf.mxu1 }
  0xcb   : > { %v699_v19 = vadd.f32 %v2290_v39, %v698_v18 }
  0xcd   : > { %v728_v22 = vadd.f32 %v727_v20, %v699_v19 }
  0xd0   : > { %1374 = vmatmul.msk.f32.gmra.mxu3 %vm659_vm0, %v388_v21 }
  0xd1   : > { %v756_v23 = vpop.f32.mrf.mxu2  ;;  %v785_v24 = vpop.f32.mrf.mxu3 }
  0xd2   : > { %v757_v25 = vadd.f32 %v756_v23, %v728_v22 }
  0xd4   : > { %v786_v26 = vadd.f32 %v785_v24, %v757_v25  ;;  %v805_v27 = vpop.f32.mrf.mxu0  ;;  %v834_v30 = vpop.f32.mrf.mxu1 }
  0xd5   : > { %v806_v29 = vadd.f32 %v805_v27, %v777_v59 }
  0xd7   : > { %v835_v31 = vadd.f32 %v834_v30, %v806_v29  ;;  %v1195_v29 = vld [vmem:[%s2367_s5] sm:$0xf] }
  0xd8   : > { %1375 = vmatmul.msk.f32.gmra.mxu3 %vm659_vm0, %v404_v28  ;;  %1410 = vmatpush.msk.msra.mxu1 %vm1213_vm2, %v1195_v29 }
  0xd9   : > { %1381 = vmatpush.msk.msrb.mxu0 %vm1213_vm2, %v1195_v29  ;;  %v1423_v29 = vld [vmem:[#allocation2] ss:$0 sm:$0xff] }
  0xdb   : > { %v863_v32 = vpop.f32.mrf.mxu2  ;;  %v892_v33 = vpop.f32.mrf.mxu3 }
  0xdc   : > { %v864_v34 = vadd.f32 %v863_v32, %v835_v31 }
  0xde   : > { %v893_v35 = vadd.f32 %v892_v33, %v864_v34  ;;  %v808_v36 = vpop.f32.mrf.mxu0  ;;  %v837_v38 = vpop.f32.mrf.mxu1 }
  0xdf   : > { %v809_v37 = vadd.f32 %v808_v36, %v780_v8 }
  0xe1   : > { %v838_v39 = vadd.f32 %v837_v38, %v809_v37 }
  0xe5   : > { %v866_v40 = vpop.f32.mrf.mxu2  ;;  %v895_v41 = vpop.f32.mrf.mxu3 }
  0xe6   : > { %v867_v42 = vadd.f32 %v866_v40, %v838_v39 }
  0xe8   : > { %v896_v43 = vadd.f32 %v895_v41, %v867_v42  ;;  %v811_v44 = vpop.f32.mrf.mxu0  ;;  %v840_v46 = vpop.f32.mrf.mxu1 }
  0xe9   : > { %v812_v45 = vadd.f32 %v811_v44, %v783_v17 }
  0xeb   : > { %v841_v47 = vadd.f32 %v840_v46, %v812_v45 }
  0xef   : > { %v869_v48 = vpop.f32.mrf.mxu2  ;;  %v898_v49 = vpop.f32.mrf.mxu3 }
  0xf0   : > { %v870_v50 = vadd.f32 %v869_v48, %v841_v47 }
  0xf2   : > { %v899_v51 = vadd.f32 %v898_v49, %v870_v50  ;;  %v814_v52 = vpop.f32.mrf.mxu0  ;;  %v843_v54 = vpop.f32.mrf.mxu1 }
  0xf3   : > { %v815_v53 = vadd.f32 %v814_v52, %v786_v26 }
  0xf5   : > { %v844_v55 = vadd.f32 %v843_v54, %v815_v53 }
  0xf9   : > { %v872_v56 = vpop.f32.mrf.mxu2  ;;  %v901_v57 = vpop.f32.mrf.mxu3 }
  0xfa   : > { %v873_v58 = vadd.f32 %v872_v56, %v844_v55 }
  0xfc   : > { %v902_v59 = vadd.f32 %v901_v57, %v873_v58  ;;  %v950_v62 = vpop.f32.mrf.mxu1  ;;  %v921_v63 = vpop.f32.mrf.mxu0 }
  0xfd   : > { %v922_v14 = vadd.f32 %v921_v63, %v893_v35 }
  0xff   : > { %v951_v16 = vadd.f32 %v950_v62, %v922_v14 }
 0x103   : > { %v1008_v60 = vpop.f32.mrf.mxu3  ;;  %v979_v0 = vpop.f32.mrf.mxu2 }
 0x104   : > { %v980_v17 = vadd.f32 %v979_v0, %v951_v16  ;;  %v1422_v16 = vld [vmem:[%s2368_s6] ss:$0 sm:$0xff] }
 0x106   : > { %v953_v2 = vpop.f32.mrf.mxu1  ;;  %v924_v3 = vpop.f32.mrf.mxu0  ;;  %v1009_v22 = vadd.f32 %v1008_v60, %v980_v17 }
 0x107   : > { %v925_v19 = vadd.f32 %v924_v3, %v896_v43  ;;  %v1250_v3 = vld [vmem:[%s2369_s7] sm:$0x7] }
 0x108   : > { %1411 = vmatpush.msk.msra.mxu2 %vm1268_vm4, %v1250_v3 }
 0x109   : > { %v954_v24 = vadd.f32 %v953_v2, %v925_v19  ;;  %v1421_v2 = vld [vmem:[%s2366_s4] ss:$0 sm:$0xff] }
 0x10d   : > { %v1011_v61 = vpop.f32.mrf.mxu3  ;;  %v982_v4 = vpop.f32.mrf.mxu2 }
 0x10e   : > { %v983_v26 = vadd.f32 %v982_v4, %v954_v24 }
 0x110   : > { %v956_v7 = vpop.f32.mrf.mxu1  ;;  %v927_v8 = vpop.f32.mrf.mxu0  ;;  %v1012_v31 = vadd.f32 %v1011_v61, %v983_v26 }
 0x111   : > { %v928_v27 = vadd.f32 %v927_v8, %v899_v51 }
 0x113   : > { %v957_v35 = vadd.f32 %v956_v7, %v928_v27 }
 0x117   : > { %v1014_v1 = vpop.f32.mrf.mxu3  ;;  %v985_v9 = vpop.f32.mrf.mxu2 }
 0x118   : > { %v986_v38 = vadd.f32 %v985_v9, %v957_v35 }
 0x11a   : > { %v959_v11 = vpop.f32.mrf.mxu1  ;;  %v930_v12 = vpop.f32.mrf.mxu0  ;;  %v1015_v42 = vadd.f32 %v1014_v1, %v986_v38 }
 0x11b   : > { %v931_v40 = vadd.f32 %v930_v12, %v902_v59 }
 0x11d   : > { %v960_v46 = vadd.f32 %v959_v11, %v931_v40 }
 0x121   : > { %v1017_v6 = vpop.f32.mrf.mxu3  ;;  %v988_v13 = vpop.f32.mrf.mxu2 }
 0x122   : > { %v989_v50 = vadd.f32 %v988_v13, %v960_v46 }
 0x124   : > { %v1037_v20 = vpop.f32.mrf.mxu0  ;;  %v1018_v53 = vadd.f32 %v1017_v6, %v989_v50 }
 0x125   : > { %v1066_v18 = vpop.f32.mrf.mxu1  ;;  %v1038_v25 = vadd.f32 %v1037_v20, %v1009_v22 }
 0x127   : > { %v1067_v28 = vadd.f32 %v1066_v18, %v1038_v25 }
 0x12a   : > { %v1040_v10 = vpop.f32.mrf.mxu3 }
 0x12b   : > { %v1095_v21 = vpop.f32.mrf.mxu2  ;;  %v1041_v36 = vadd.f32 %v1040_v10, %v1012_v31 }
 0x12c   : > { %v1096_v32 = vadd.f32 %v1095_v21, %v1067_v28 }
 0x12d   : > { %v1069_v30 = vpop.f32.mrf.mxu1 }
 0x12e   : > { %v1070_v41 = vadd.f32 %v1069_v30, %v1041_v36 }
 0x132   : > { %v1043_v15 = vpop.f32.mrf.mxu3 }
 0x133   : > { %v1098_v33 = vpop.f32.mrf.mxu2  ;;  %v1044_v47 = vadd.f32 %v1043_v15, %v1015_v42 }
 0x134   : > { %v1099_v43 = vadd.f32 %v1098_v33, %v1070_v41 }
 0x135   : > { %v1072_v44 = vpop.f32.mrf.mxu1 }
 0x136   : > { %v1073_v52 = vadd.f32 %v1072_v44, %v1044_v47 }
 0x13b   : > { %v1046_v23 = vpop.f32.mrf.mxu3 }
 0x13c   : > { %v1101_v49 = vpop.f32.mrf.mxu2  ;;  %v1047_v56 = vadd.f32 %v1046_v23, %v1018_v53 }
 0x13d   : > { %v1102_v54 = vadd.f32 %v1101_v49, %v1073_v52  ;;  %v1075_v58 = vpop.f32.mrf.mxu1 }
 0x13e   : > { %v1076_v61 = vadd.f32 %v1075_v58, %v1047_v56 }
 0x143   : > { %v1124_v34 = vpop.f32.mrf.mxu3 }
 0x144   : > { %v1125_v37 = vadd.f32 %v1124_v34, %v1096_v32  ;;  %v1104_v60 = vpop.f32.mrf.mxu2 }
 0x145   : > { %v1105_v62 = vadd.f32 %v1104_v60, %v1076_v61 }
 0x146   : > { %v1136_v39 = vmax.f32 %v1125_v37, 0.0 }
 0x148   : > { %1377 = vmatmul.msk.f32.vlgmr.msra.gmra.mxu0 %vm1145_vm3, %v1136_v39 }
 0x149   : > { %1386 = vmatpush.msk.msra.mxu0 %vm1268_vm4, %v1250_v3 }
 0x14b   : > { %v1127_v45 = vpop.f32.mrf.mxu3 }
 0x14c   : > { %v1128_v48 = vadd.f32 %v1127_v45, %v1099_v43 }
 0x14e   : > { %v1137_v51 = vmax.f32 %v1128_v48, 0.0 }
 0x150   : > { %1378 = vmatmul.msk.f32.gmra.mxu0 %vm1145_vm3, %v1137_v51 }
 0x153   : > { %v1130_v55 = vpop.f32.mrf.mxu3 }
 0x154   : > { %v1131_v57 = vadd.f32 %v1130_v55, %v1102_v54 }
 0x156   : > { %v1138_v59 = vmax.f32 %v1131_v57, 0.0 }
 0x158   : > { %1379 = vmatmul.msk.f32.gmra.mxu0 %vm1145_vm3, %v1138_v59 }
 0x15b   : > { %v1133_v63 = vpop.f32.mrf.mxu3 }
 0x15c   : > { %v1134_v0 = vadd.f32 %v1133_v63, %v1105_v62 }
 0x15e   : > { %v1139_v1 = vmax.f32 %v1134_v0, 0.0 }
 0x160   : > { %1380 = vmatmul.msk.f32.gmra.mxu0 %vm1145_vm3, %v1139_v1 }
 0x1c5   : > { %v1179_v4 = vpop.f32.mrf.mxu0 }
 0x1c6   : > { %v1180_v5 = vadd.f32 %v1421_v2, %v1179_v4 }
 0x1c8   : > { %v1191_v6 = vmax.f32 %v1180_v5, 0.0 }
 0x1ca   : > { %1382 = vmatmul.msk.f32.vlgmr.msrb.gmra.mxu0 %vm1200_vm5, %v1191_v6 }
 0x1cd   : > { %v1182_v7 = vpop.f32.mrf.mxu0 }
 0x1ce   : > { %v1183_v8 = vadd.f32 %v1421_v2, %v1182_v7 }
 0x1d0   : > { %v1192_v9 = vmax.f32 %v1183_v8, 0.0 }
 0x1d2   : > { %1383 = vmatmul.msk.f32.vlgmr.msra.gmra.mxu1 %vm1200_vm5, %v1192_v9 }
 0x1d5   : > { %v1185_v10 = vpop.f32.mrf.mxu0 }
 0x1d6   : > { %v1186_v11 = vadd.f32 %v1421_v2, %v1185_v10 }
 0x1d8   : > { %v1193_v12 = vmax.f32 %v1186_v11, 0.0 }
 0x1da   : > { %1384 = vmatmul.msk.f32.gmra.mxu1 %vm1200_vm5, %v1193_v12 }
 0x1dd   : > { %v1188_v13 = vpop.f32.mrf.mxu0 }
 0x1de   : > { %v1189_v14 = vadd.f32 %v1421_v2, %v1188_v13 }
 0x1e0   : > { %v1194_v15 = vmax.f32 %v1189_v14, 0.0 }
 0x1e2   : > { %1385 = vmatmul.msk.f32.gmra.mxu1 %vm1200_vm5, %v1194_v15 }
 0x247   : > { %v1234_v17 = vpop.f32.mrf.mxu0 }
 0x248   : > { %v1235_v18 = vadd.f32 %v1422_v16, %v1234_v17 }
 0x24a   : > { %v1246_v19 = vmax.f32 %v1235_v18, 0.0 }
 0x24c   : > { %1387 = vmatmul.msk.f32.vlgmr.msra.gmra.mxu0 %vm1255_vm6, %v1246_v19 }
 0x24f   : > { %v1237_v20 = vpop.f32.mrf.mxu1 }
 0x250   : > { %v1238_v21 = vadd.f32 %v1422_v16, %v1237_v20 }
 0x252   : > { %v1247_v22 = vmax.f32 %v1238_v21, 0.0 }
 0x254   : > { %1388 = vmatmul.msk.f32.vlgmr.msra.gmra.mxu2 %vm1255_vm6, %v1247_v22 }
 0x257   : > { %v1240_v23 = vpop.f32.mrf.mxu1 }
 0x258   : > { %v1241_v24 = vadd.f32 %v1422_v16, %v1240_v23 }
 0x25a   : > { %v1248_v25 = vmax.f32 %v1241_v24, 0.0 }
 0x25c   : > { %1389 = vmatmul.msk.f32.gmra.mxu2 %vm1255_vm6, %v1248_v25 }
 0x25f   : > { %v1243_v26 = vpop.f32.mrf.mxu1 }
 0x260   : > { %v1244_v27 = vadd.f32 %v1422_v16, %v1243_v26 }
 0x262   : > { %v1249_v28 = vmax.f32 %v1244_v27, 0.0 }
 0x264   : > { %1390 = vmatmul.msk.f32.gmra.mxu2 %vm1255_vm6, %v1249_v28 }
 0x2c9   : > { %v1289_v30 = vpop.f32.mrf.mxu0 }
 0x2ca   : > { %v1290_v31 = vadd.f32 %v1423_v29, %v1289_v30 }
 0x2cc   : > { %1302 = vst.msk [vmem:[%s339_s30] sm:$0xff] %vm1301_vm7, %v1290_v31 }
 0x2d7   : > { %v1292_v32 = vpop.f32.mrf.mxu2 }
 0x2d8   : > { %v1293_v33 = vadd.f32 %v1423_v29, %v1292_v32 }
 0x2da   : > { %1303 = vst.msk [vmem:[%s339_s30 + $0x8] sm:$0xff] %vm1301_vm7, %v1293_v33 }
 0x2df   : > { %v1295_v34 = vpop.f32.mrf.mxu2 }
 0x2e0   : > { %v1296_v35 = vadd.f32 %v1423_v29, %v1295_v34 }
 0x2e2   : > { %1304 = vst.msk [vmem:[%s339_s30 + $0x10] sm:$0xff] %vm1301_vm7, %v1296_v35 }
 0x2e7   : > { %v1298_v36 = vpop.f32.mrf.mxu2 }
 0x2e8   : > { %v1299_v37 = vadd.f32 %v1423_v29, %v1298_v36 }
 0x2ea   : > { %1305 = vst.msk [vmem:[%s339_s30 + $0x18] sm:$0xff] %vm1301_vm7, %v1299_v37 }
 0x2eb PF: > { %s21_s11 = sadd.s32 1, %s1430_s11  }
 0x2ec   : > { %p18_p4 = scmp.ge.s32.totalorder %s21_s11, 6  }
 0x2ee   :  { %20 = sbr.rel (!%p18_p4) target bundleno = 3 (0x3), region = 86 }

</bundles_post_ra>
